<compile_context>
chip_gen: v7x
topology: tpu7x:2x2x1
jax: 0.10.0
libtpu: 0.0.40
codegen_flags: <defaults>
</compile_context>

<pallas_src>
import jax
import jax.numpy as jnp
import numpy as np
from jax.experimental import pallas as pl
from jax.experimental.pallas import tpu as pltpu

# ----------------------------- problem sizes -----------------------------
B, C, N = 2, 4, 16       # batch, channels, sequence length
K = 16                   # external-attention memory size (self.k = 16)
BN_EPS = 1e-5


# ------------------------------ Pallas kernel ----------------------------
def ea_kernel(x_ref, w1_ref, b1_ref, w0_ref, wl1_ref, w2_ref, o_ref):
    """x_ref/o_ref: (B, C, N).  w1 (C,C), b1 (C,1), w0 (K,C), wl1 (C,K), w2 (C,C)."""
    Bk, Ck, Nk = x_ref.shape

    w1 = w1_ref[...]            # conv1 weight
    b1 = b1_ref[...]            # conv1 bias
    w0 = w0_ref[...]            # linear_0 weight
    wl1 = wl1_ref[...]          # linear_1 weight
    w2 = w2_ref[...]            # conv2[0] weight

    inv_count = jnp.float32(1.0 / (Bk * Nk))
    xs, zs = [], []
    sum_z = jnp.zeros((Ck, 1), jnp.float32)

    for b in range(Bk):                                   # static unroll, B == 2
        xb = x_ref[b]                                     # (C, N)

        # conv1 (1x1) + bias, then linear_0 (1x1, no bias)
        y = jnp.dot(w1, xb, preferred_element_type=jnp.float32) + b1        # (C, N)
        logits = jnp.dot(w0, y, preferred_element_type=jnp.float32)         # (K, N)

        # softmax over the sequence axis — plain full-lane reduction, no masking
        m = jnp.max(logits, axis=-1, keepdims=True)                         # (K, 1)
        e = jnp.exp(logits - m)
        den = jnp.sum(e, axis=-1, keepdims=True)
        attn = e / den                                    # exact recip (accuracy)

        # renormalize over the K memory axis (EUP approx reciprocal is fine here:
        # its relative error is re-normalized downstream)
        col = jnp.sum(attn, axis=0, keepdims=True)                          # (1, N)
        attn = attn * pl.reciprocal(jnp.float32(1e-9) + col, approx=True)

        # linear_1 (1x1) then conv2[0] (1x1, no bias)
        z = jnp.dot(wl1, attn, preferred_element_type=jnp.float32)          # (C, N)
        z = jnp.dot(w2, z, preferred_element_type=jnp.float32)              # (C, N)

        xs.append(xb)
        zs.append(z)
        sum_z = sum_z + jnp.sum(z, axis=-1, keepdims=True)

    # BatchNorm1d (training mode: biased batch stats over (B, N); gamma=1, beta=0).
    # Two-pass variance: (z - mean) is needed for the output anyway.
    # TODO(synk): running_mean / running_var buffer updates (module state
    # mutation) are not representable here; only the normalization math is done.
    mean = sum_z * inv_count                              # (C, 1)
    var_acc = jnp.zeros((Ck, 1), jnp.float32)
    zcs = []
    for z in zs:
        zc = z - mean
        zcs.append(zc)
        var_acc = var_acc + jnp.sum(zc * zc, axis=-1, keepdims=True)
    inv_std = jax.lax.rsqrt(var_acc * inv_count + jnp.float32(BN_EPS))

    # residual + ReLU, written back directly in (B, C, N) layout
    for b in range(Bk):
        o_ref[b] = jnp.maximum(zcs[b] * inv_std + xs[b], 0.0)


@jax.jit
def external_attention(x, w1, b1, w0, wl1, w2):
    Bx, Cx, Nx = x.shape
    Kx = w0.shape[0]
    vmem = pl.BlockSpec(memory_space=pltpu.MemorySpace.VMEM)
    cost = pl.CostEstimate(
        flops=2 * Bx * Nx * (2 * Cx * Cx + 2 * Kx * Cx)        # 4 tiny matmuls/batch
        + 10 * Bx * Nx * (Kx + Cx),                            # softmax / renorm / BN
        transcendentals=Bx * (Kx * Nx + Nx) + Cx,              # exp + recip + rsqrt
        bytes_accessed=4 * (2 * Bx * Cx * Nx + 3 * Cx * Cx + Cx + 2 * Kx * Cx),
    )
    # Gridless single invocation: everything fits trivially in VMEM and a grid
    # would only add serial-loop overhead at this latency-bound size.  If the
    # problem is scaled up, add a ("parallel",) grid over the lane axis and pad
    # the last dim to a multiple of 128 for unmasked stores.
    return pl.pallas_call(
        ea_kernel,
        out_shape=jax.ShapeDtypeStruct((Bx, Cx, Nx), jnp.float32),
        in_specs=[vmem] * 6,
        out_specs=vmem,
        cost_estimate=cost,
    )(x, w1, b1, w0, wl1, w2)


# ------------------------- pure-JAX reference model -----------------------
def reference(x, w1, b1, w0, wl1, w2):
    y = jnp.einsum('oc,bcn->bon', w1, x) + b1[None, :, :]
    attn = jnp.einsum('kc,bcn->bkn', w0, y)
    attn = jax.nn.softmax(attn, axis=-1)
    attn = attn / (1e-9 + attn.sum(axis=1, keepdims=True))
    z = jnp.einsum('ck,bkn->bcn', wl1, attn)
    z = jnp.einsum('oc,bcn->bon', w2, z)
    mean = z.mean(axis=(0, 2), keepdims=True)
    var = ((z - mean) ** 2).mean(axis=(0, 2), keepdims=True)
    z = (z - mean) / jnp.sqrt(var + BN_EPS)
    return jax.nn.relu(z + x)


# --------------------------------- main -----------------------------------
if __name__ == "__main__":
    key = jax.random.PRNGKey(0)
    kx, k1, kb, k0, kl, k2 = jax.random.split(key, 6)

    # Deterministic synthetic parameters, matching the module's init scheme:
    # Conv1d weight ~ Normal(0, sqrt(2 / (kernel_size * out_channels)))
    x = jax.random.normal(kx, (B, C, N), jnp.float32)
    w1 = jax.random.normal(k1, (C, C), jnp.float32) * np.sqrt(2.0 / C)   # conv1
    b1 = jax.random.normal(kb, (C, 1), jnp.float32) * 0.1                # conv1 bias
    w0 = jax.random.normal(k0, (K, C), jnp.float32) * np.sqrt(2.0 / K)   # linear_0
    wl1 = jax.random.normal(kl, (C, K), jnp.float32) * np.sqrt(2.0 / C)  # linear_1
    w2 = jax.random.normal(k2, (C, C), jnp.float32) * np.sqrt(2.0 / C)   # conv2[0]
    # BatchNorm1d: gamma=1, beta=0 (per module init) -> folded into the kernel.

    out = external_attention(x, w1, b1, w0, wl1, w2)
    out = jax.block_until_ready(out)

    ref = reference(x, w1, b1, w0, wl1, w2)
    # Only remaining approximation is the EUP approx reciprocal on the K-renorm;
    # everything else matches the exact reference to ~1e-6.
    np.testing.assert_allclose(np.asarray(out), np.asarray(ref),
                               rtol=5e-3, atol=5e-3)
    print("KERNEL_OK")
</pallas_src>

<mosaic_0001>
module attributes {stable_mosaic.version = 11 : i64} {
  func.func @ea_kernel(%arg0: memref<2x4x16xf32, #tpu.memory_space<vmem>>, %arg1: memref<4x4xf32, #tpu.memory_space<vmem>>, %arg2: memref<4x1xf32, #tpu.memory_space<vmem>>, %arg3: memref<16x4xf32, #tpu.memory_space<vmem>>, %arg4: memref<4x16xf32, #tpu.memory_space<vmem>>, %arg5: memref<4x4xf32, #tpu.memory_space<vmem>>, %arg6: memref<2x4x16xf32, #tpu.memory_space<vmem>>) attributes {dimension_semantics = [], scalar_prefetch = 0 : i64, scratch_operands = 0 : i64, tpu.core_type = #tpu.core_type<tc>} {
    %c0 = arith.constant 0 : index
    %c0_0 = arith.constant 0 : index
    %0 = vector.load %arg1[%c0, %c0_0] : memref<4x4xf32, #tpu.memory_space<vmem>>, vector<4x4xf32>
    %c0_1 = arith.constant 0 : index
    %c0_2 = arith.constant 0 : index
    %1 = vector.load %arg2[%c0_1, %c0_2] : memref<4x1xf32, #tpu.memory_space<vmem>>, vector<4x1xf32>
    %c0_3 = arith.constant 0 : index
    %c0_4 = arith.constant 0 : index
    %2 = vector.load %arg3[%c0_3, %c0_4] : memref<16x4xf32, #tpu.memory_space<vmem>>, vector<16x4xf32>
    %c0_5 = arith.constant 0 : index
    %c0_6 = arith.constant 0 : index
    %3 = vector.load %arg4[%c0_5, %c0_6] : memref<4x16xf32, #tpu.memory_space<vmem>>, vector<4x16xf32>
    %c0_7 = arith.constant 0 : index
    %c0_8 = arith.constant 0 : index
    %4 = vector.load %arg5[%c0_7, %c0_8] : memref<4x4xf32, #tpu.memory_space<vmem>>, vector<4x4xf32>
    %cst = arith.constant 0.000000e+00 : f32
    %5 = vector.broadcast %cst : f32 to vector<4x1xf32>
    %c0_9 = arith.constant 0 : index
    %c0_10 = arith.constant 0 : index
    %c0_11 = arith.constant 0 : index
    %6 = vector.load %arg0[%c0_9, %c0_10, %c0_11] : memref<2x4x16xf32, #tpu.memory_space<vmem>>, vector<1x4x16xf32>
    %7 = vector.shape_cast %6 : vector<1x4x16xf32> to vector<4x16xf32>
    %cst_12 = arith.constant dense<0.000000e+00> : vector<4x16xf32>
    %8 = tpu.matmul %0, %7, %cst_12 {dimension_numbers = #tpu.dot_dimension_numbers<[1], [0], [0], [1], [0, 0, 1, 1], [], []>} : vector<4x4xf32>, vector<4x16xf32>, vector<4x16xf32> -> vector<4x16xf32>
    %9 = vector.broadcast %1 : vector<4x1xf32> to vector<4x16xf32>
    %10 = arith.addf %8, %9 : vector<4x16xf32>
    %cst_13 = arith.constant dense<0.000000e+00> : vector<16x16xf32>
    %11 = tpu.matmul %2, %10, %cst_13 {dimension_numbers = #tpu.dot_dimension_numbers<[1], [0], [0], [1], [0, 0, 1, 1], [], []>} : vector<16x4xf32>, vector<4x16xf32>, vector<16x16xf32> -> vector<16x16xf32>
    %cst_14 = arith.constant dense<0xFF800000> : vector<16xf32>
    %12 = vector.multi_reduction <maximumf>, %11, %cst_14 [1] : vector<16x16xf32> to vector<16xf32>
    %13 = vector.shape_cast %12 : vector<16xf32> to vector<16x1xf32>
    %14 = vector.broadcast %13 : vector<16x1xf32> to vector<16x16xf32>
    %15 = arith.subf %11, %14 : vector<16x16xf32>
    %16 = math.exp %15 : vector<16x16xf32>
    %cst_15 = arith.constant dense<0.000000e+00> : vector<16xf32>
    %17 = vector.multi_reduction <add>, %16, %cst_15 [1] : vector<16x16xf32> to vector<16xf32>
    %18 = vector.shape_cast %17 : vector<16xf32> to vector<16x1xf32>
    %19 = vector.broadcast %18 : vector<16x1xf32> to vector<16x16xf32>
    %20 = arith.divf %16, %19 : vector<16x16xf32>
    %cst_16 = arith.constant dense<0.000000e+00> : vector<16xf32>
    %21 = vector.multi_reduction <add>, %20, %cst_16 [0] : vector<16x16xf32> to vector<16xf32>
    %22 = vector.shape_cast %21 : vector<16xf32> to vector<1x16xf32>
    %cst_17 = arith.constant 9.99999971E-10 : f32
    %23 = vector.broadcast %cst_17 : f32 to vector<1x16xf32>
    %24 = arith.addf %23, %22 : vector<1x16xf32>
    %25 = tpu.reciprocal %24 {approx = true} : vector<1x16xf32> -> vector<1x16xf32>
    %26 = vector.broadcast %25 : vector<1x16xf32> to vector<16x16xf32>
    %27 = arith.mulf %20, %26 : vector<16x16xf32>
    %cst_18 = arith.constant dense<0.000000e+00> : vector<4x16xf32>
    %28 = tpu.matmul %3, %27, %cst_18 {dimension_numbers = #tpu.dot_dimension_numbers<[1], [0], [0], [1], [0, 0, 1, 1], [], []>} : vector<4x16xf32>, vector<16x16xf32>, vector<4x16xf32> -> vector<4x16xf32>
    %cst_19 = arith.constant dense<0.000000e+00> : vector<4x16xf32>
    %29 = tpu.matmul %4, %28, %cst_19 {dimension_numbers = #tpu.dot_dimension_numbers<[1], [0], [0], [1], [0, 0, 1, 1], [], []>} : vector<4x4xf32>, vector<4x16xf32>, vector<4x16xf32> -> vector<4x16xf32>
    %cst_20 = arith.constant dense<0.000000e+00> : vector<4xf32>
    %30 = vector.multi_reduction <add>, %29, %cst_20 [1] : vector<4x16xf32> to vector<4xf32>
    %31 = vector.shape_cast %30 : vector<4xf32> to vector<4x1xf32>
    %32 = arith.addf %5, %31 : vector<4x1xf32>
    %c1 = arith.constant 1 : index
    %c0_21 = arith.constant 0 : index
    %c0_22 = arith.constant 0 : index
    %33 = vector.load %arg0[%c1, %c0_21, %c0_22] : memref<2x4x16xf32, #tpu.memory_space<vmem>>, vector<1x4x16xf32>
    %34 = vector.shape_cast %33 : vector<1x4x16xf32> to vector<4x16xf32>
    %cst_23 = arith.constant dense<0.000000e+00> : vector<4x16xf32>
    %35 = tpu.matmul %0, %34, %cst_23 {dimension_numbers = #tpu.dot_dimension_numbers<[1], [0], [0], [1], [0, 0, 1, 1], [], []>} : vector<4x4xf32>, vector<4x16xf32>, vector<4x16xf32> -> vector<4x16xf32>
    %36 = vector.broadcast %1 : vector<4x1xf32> to vector<4x16xf32>
    %37 = arith.addf %35, %36 : vector<4x16xf32>
    %cst_24 = arith.constant dense<0.000000e+00> : vector<16x16xf32>
    %38 = tpu.matmul %2, %37, %cst_24 {dimension_numbers = #tpu.dot_dimension_numbers<[1], [0], [0], [1], [0, 0, 1, 1], [], []>} : vector<16x4xf32>, vector<4x16xf32>, vector<16x16xf32> -> vector<16x16xf32>
    %cst_25 = arith.constant dense<0xFF800000> : vector<16xf32>
    %39 = vector.multi_reduction <maximumf>, %38, %cst_25 [1] : vector<16x16xf32> to vector<16xf32>
    %40 = vector.shape_cast %39 : vector<16xf32> to vector<16x1xf32>
    %41 = vector.broadcast %40 : vector<16x1xf32> to vector<16x16xf32>
    %42 = arith.subf %38, %41 : vector<16x16xf32>
    %43 = math.exp %42 : vector<16x16xf32>
    %cst_26 = arith.constant dense<0.000000e+00> : vector<16xf32>
    %44 = vector.multi_reduction <add>, %43, %cst_26 [1] : vector<16x16xf32> to vector<16xf32>
    %45 = vector.shape_cast %44 : vector<16xf32> to vector<16x1xf32>
    %46 = vector.broadcast %45 : vector<16x1xf32> to vector<16x16xf32>
    %47 = arith.divf %43, %46 : vector<16x16xf32>
    %cst_27 = arith.constant dense<0.000000e+00> : vector<16xf32>
    %48 = vector.multi_reduction <add>, %47, %cst_27 [0] : vector<16x16xf32> to vector<16xf32>
    %49 = vector.shape_cast %48 : vector<16xf32> to vector<1x16xf32>
    %cst_28 = arith.constant 9.99999971E-10 : f32
    %50 = vector.broadcast %cst_28 : f32 to vector<1x16xf32>
    %51 = arith.addf %50, %49 : vector<1x16xf32>
    %52 = tpu.reciprocal %51 {approx = true} : vector<1x16xf32> -> vector<1x16xf32>
    %53 = vector.broadcast %52 : vector<1x16xf32> to vector<16x16xf32>
    %54 = arith.mulf %47, %53 : vector<16x16xf32>
    %cst_29 = arith.constant dense<0.000000e+00> : vector<4x16xf32>
    %55 = tpu.matmul %3, %54, %cst_29 {dimension_numbers = #tpu.dot_dimension_numbers<[1], [0], [0], [1], [0, 0, 1, 1], [], []>} : vector<4x16xf32>, vector<16x16xf32>, vector<4x16xf32> -> vector<4x16xf32>
    %cst_30 = arith.constant dense<0.000000e+00> : vector<4x16xf32>
    %56 = tpu.matmul %4, %55, %cst_30 {dimension_numbers = #tpu.dot_dimension_numbers<[1], [0], [0], [1], [0, 0, 1, 1], [], []>} : vector<4x4xf32>, vector<4x16xf32>, vector<4x16xf32> -> vector<4x16xf32>
    %cst_31 = arith.constant dense<0.000000e+00> : vector<4xf32>
    %57 = vector.multi_reduction <add>, %56, %cst_31 [1] : vector<4x16xf32> to vector<4xf32>
    %58 = vector.shape_cast %57 : vector<4xf32> to vector<4x1xf32>
    %59 = arith.addf %32, %58 : vector<4x1xf32>
    %cst_32 = arith.constant 3.125000e-02 : f32
    %60 = vector.broadcast %cst_32 : f32 to vector<4x1xf32>
    %61 = arith.mulf %59, %60 : vector<4x1xf32>
    %cst_33 = arith.constant 0.000000e+00 : f32
    %62 = vector.broadcast %cst_33 : f32 to vector<4x1xf32>
    %63 = vector.broadcast %61 : vector<4x1xf32> to vector<4x16xf32>
    %64 = arith.subf %29, %63 : vector<4x16xf32>
    %65 = arith.mulf %64, %64 : vector<4x16xf32>
    %cst_34 = arith.constant dense<0.000000e+00> : vector<4xf32>
    %66 = vector.multi_reduction <add>, %65, %cst_34 [1] : vector<4x16xf32> to vector<4xf32>
    %67 = vector.shape_cast %66 : vector<4xf32> to vector<4x1xf32>
    %68 = arith.addf %62, %67 : vector<4x1xf32>
    %69 = vector.broadcast %61 : vector<4x1xf32> to vector<4x16xf32>
    %70 = arith.subf %56, %69 : vector<4x16xf32>
    %71 = arith.mulf %70, %70 : vector<4x16xf32>
    %cst_35 = arith.constant dense<0.000000e+00> : vector<4xf32>
    %72 = vector.multi_reduction <add>, %71, %cst_35 [1] : vector<4x16xf32> to vector<4xf32>
    %73 = vector.shape_cast %72 : vector<4xf32> to vector<4x1xf32>
    %74 = arith.addf %68, %73 : vector<4x1xf32>
    %cst_36 = arith.constant 3.125000e-02 : f32
    %75 = vector.broadcast %cst_36 : f32 to vector<4x1xf32>
    %76 = arith.mulf %74, %75 : vector<4x1xf32>
    %cst_37 = arith.constant 9.99999974E-6 : f32
    %77 = vector.broadcast %cst_37 : f32 to vector<4x1xf32>
    %78 = arith.addf %76, %77 : vector<4x1xf32>
    %79 = math.rsqrt %78 : vector<4x1xf32>
    %80 = vector.broadcast %79 : vector<4x1xf32> to vector<4x16xf32>
    %81 = arith.mulf %64, %80 : vector<4x16xf32>
    %82 = arith.addf %81, %7 : vector<4x16xf32>
    %cst_38 = arith.constant 0.000000e+00 : f32
    %83 = vector.broadcast %cst_38 : f32 to vector<4x16xf32>
    %84 = arith.maximumf %82, %83 : vector<4x16xf32>
    %c0_39 = arith.constant 0 : index
    %c0_40 = arith.constant 0 : index
    %c0_41 = arith.constant 0 : index
    %85 = vector.load %arg6[%c0_39, %c0_40, %c0_41] : memref<2x4x16xf32, #tpu.memory_space<vmem>>, vector<1x4x16xf32>
    %86 = vector.shape_cast %85 : vector<1x4x16xf32> to vector<4x16xf32>
    %87 = vector.shape_cast %84 : vector<4x16xf32> to vector<1x4x16xf32>
    tpu.vector_store %arg6[%c0_39, %c0_40, %c0_41], %87 {strides = array<i32>} : memref<2x4x16xf32, #tpu.memory_space<vmem>>, vector<1x4x16xf32>,
    %88 = vector.broadcast %79 : vector<4x1xf32> to vector<4x16xf32>
    %89 = arith.mulf %70, %88 : vector<4x16xf32>
    %90 = arith.addf %89, %34 : vector<4x16xf32>
    %cst_42 = arith.constant 0.000000e+00 : f32
    %91 = vector.broadcast %cst_42 : f32 to vector<4x16xf32>
    %92 = arith.maximumf %90, %91 : vector<4x16xf32>
    %c1_43 = arith.constant 1 : index
    %c0_44 = arith.constant 0 : index
    %c0_45 = arith.constant 0 : index
    %93 = vector.load %arg6[%c1_43, %c0_44, %c0_45] : memref<2x4x16xf32, #tpu.memory_space<vmem>>, vector<1x4x16xf32>
    %94 = vector.shape_cast %93 : vector<1x4x16xf32> to vector<4x16xf32>
    %95 = vector.shape_cast %92 : vector<4x16xf32> to vector<1x4x16xf32>
    tpu.vector_store %arg6[%c1_43, %c0_44, %c0_45], %95 {strides = array<i32>} : memref<2x4x16xf32, #tpu.memory_space<vmem>>, vector<1x4x16xf32>,
    return
  }
}

</mosaic_0001>

<bundles_post_ra>
// kernel: external_attention.1
= control target key start
LH: loop header
LB: loop body
LE: loop exit
PB: predicated region body
PF: predicated region fallthrough
CT: control target
= control target key end

     0   :  { %vm40_vm0 = vcmask 1043456   ;;  %vm36_vm1 = vcmask 31744   ;;  %v905_v1 = vmov 0.0   ;;  %vm906_vm2 = vmmov 0   ;;  %s1067_s0 = inlined_call_operand.vmem [shape: f32[2,4,16], index: 0, kind: input, shape index: {}]   ;;  %s1068_s1 = inlined_call_operand.vmem [shape: f32[4,4], index: 1, kind: input, shape index: {}]   ;;  %s1069_s2 = inlined_call_operand.vmem [shape: f32[4,1], index: 2, kind: input, shape index: {}]   ;;  %s1070_s3 = inlined_call_operand.vmem [shape: f32[16,4], index: 3, kind: input, shape index: {}]   ;;  %s1071_s4 = inlined_call_operand.vmem [shape: f32[4,16], index: 4, kind: input, shape index: {}]   ;;  %s1072_s5 = inlined_call_operand.vmem [shape: f32[4,4], index: 5, kind: input, shape index: {}]   ;;  %s1073_s6 = inlined_call_operand.hbm [shape: f32[2,4,16], index: 6, kind: output, shape index: {}]  }
   0x1   :  { %v950_v0 = vld [vmem:[%s1067_s0] sm:$0xf]  ;;  %801 = vmatprep.subr.mxu0 %v905_v1  ;;  %803 = vmatprep.mubr.msk.f32.mxu0 %vm906_vm2, %v905_v1  ;;  %v907_v4 = vmov 0  }
   0x2   :  { %v958_v2 = vld [vmem:[%s1068_s1] sm:$0xf]  ;;  %802 = vmatpush3.msk.msra.mxu0 %vm40_vm0, %v950_v0  ;;  %858 = vset.pattern.permute.xlu0 %v907_v4 }
   0x3   :  { %v25_v3 = vld [vmem:[%s1069_s2] sm:$0xf] }
   0x4   :  { %11 = vsyncpa [#allocation3], 0  ;;  %804 = vmatmul.mubr.msk.f32.vlgmr.msra.gmra.mrb[0].mxu0 %vm36_vm1, %v958_v2  ;;  %33 = vperm.xlu0 %858, %v25_v3   ;;  %v972_v5 = vld [vmem:[%s1070_s3] sm:$0xff]  ;;  %v982_v10 = vld [vmem:[%s1070_s3 + $0x8] sm:$0xff]  ;;  %vm198_vm3 = vcmask 130048   ;;  %v908_v25 = vmov 0.0|0.0  }
   0x5   :  { %815 = vmatprep.mubr.msk.f32.mxu0 %vm906_vm2, %v905_v1  ;;  %808 = vmatprep.mubr.msk.f32.mxu1 %vm36_vm1, %v972_v5  ;;  %v1000_v46 = vld [vmem:[%s1071_s4] sm:$0xf]  ;;  %v1006_v47 = vld [vmem:[%s1067_s0 + $0x4] sm:$0xf]  ;;  %vm383_vm4 = vcmask 125952   ;;  %s909_s0 = smov [#allocation2]  }
   0x6   :  { %845 = vmatprep.subr.bf16.mxu0 %v908_v25  ;;  %v1021_v48 = vld [vmem:[%s1072_s5] sm:$0xf]  ;;  %s753_s5 = sshll.u32 %s909_s0, 4  ;;  %s754_s5 = int_to_ptr.vmem [resolvable:$true] %s753_s5 }
   0x7   :  { %s881_s9 = scalar_lea.vmem %s754_s5, 128  ;;  %p886_p1 = scmp.lt.s32.totalorder %s754_s5, %s754_s5 }
   0x8   :  { %p882_p0 = scmp.ne.s32.totalorder %s754_s5, %s881_s9  ;;  %p887_p2 = scmp.lt.s32.totalorder %s881_s9, %s881_s9 }
   0xa   :  { %p888_p3 = por %p887_p2, %p886_p1 }
   0xc   :  { %p889_p4 = pnand %p888_p3, %p882_p0 }
  0x83   :  { %v976_v6 = vpop.permute.xlu0 %33 }
  0xd7   :  { %v110_v7 = vpop.f32.mrb[0].mxu0 }
  0xd8   :  { %v111_v8 = vadd.f32 %v110_v7, %v976_v6  ;;  %v805_v9 = vpop.f32.mrb[1].mxu0 }
  0xda   :  { %806 = vmatprep.subr.msk.mxu1 %vm40_vm0, %v111_v8 }
  0xdb   :  { %807 = vmatpush3.msk.msra.mxu1 %vm40_vm0, %v111_v8 }
  0xdc   :  { %809 = vmatmul.mubr.msk.f32.vlgmr.msra.gmra.mrb[0].mxu1 %vm36_vm1, %v982_v10  ;;  %818 = vmatprep.subr.mxu1 %v905_v1 }
  0xdd   :  { %820 = vmatprep.mubr.msk.f32.mxu1 %vm906_vm2, %v905_v1 }
 0x1af   :  { %v810_v11 = vpop.f32.mrb[0].mxu1 }
 0x1b0   :  { %v189_v12 = vpop.f32.mrb[1].mxu1  ;;  %v202_v13 = vsel %vm198_vm3, %v810_v11, -inf }
 0x1b1   :  { %203 = vmax.xlane.f32.xlu1 %v202_v13  ;;  %v199_v14 = vsel %vm198_vm3, %v189_v12, -inf }
 0x1b2   :  { %200 = vmax.xlane.f32.xlu0 %v199_v14 }
 0x23e   :  { %v204_v15 = vpop.xlane.xlu1 %203 }
 0x23f   :  { %v206_v16 = vsub.f32 %v810_v11, %v204_v15  ;;  %v201_v17 = vpop.xlane.xlu0 %200 }
 0x240   :  { %v205_v18 = vsub.f32 %v189_v12, %v201_v17 }
 0x241   :  { %v209_v19 = vmul.f32 1.442695, %v206_v16 }
 0x242   :  { %v207_v20 = vmul.f32 1.442695, %v205_v18 }
 0x244   :  { %859 = vpow2.f32 %v207_v20 }
 0x245   :  { %861 = vpow2.f32 %v209_v19 }
 0x24e   :  { %v860_v21 = vpop.eup %859 }
 0x24f   :  { %v211_v22 = vsel %vm198_vm3, %v860_v21, 0.0  ;;  %v862_v23 = vpop.eup %861 }
 0x250   :  { %212 = vadd.xlane.f32.xlu1 %v211_v22  ;;  %v214_v24 = vsel %vm198_vm3, %v862_v23, 0.0 }
 0x254   :  { %215 = vadd.xlane.f32.xlu1 %v214_v24 }
 0x2dd   :  { %v213_v26 = vpop.xlane.xlu1 %212 }
 0x2de   :  { %863 = vrcp.f32 %v213_v26 }
 0x2e1   :  { %v216_v27 = vpop.xlane.xlu1 %215 }
 0x2e2   :  { %865 = vrcp.f32 %v216_v27 }
 0x2e8   :  { %v864_v28 = vpop.eup %863 }
 0x2e9   :  { %v218_v29 = vmul.f32 %v864_v28, %v860_v21 }
 0x2eb   :  { %v221_v32 = vsel %vm198_vm3, %v218_v29, 0.0 }
 0x2ec   :  { %v866_v30 = vpop.eup %865 }
 0x2ed   :  { %v220_v31 = vmul.f32 %v866_v30, %v862_v23 }
 0x2ef   :  { %v222_v33 = vsel %vm198_vm3, %v220_v31, 0.0 }
 0x2f0   :  { %v223_v34 = vadd.f32 %v222_v33, %v221_v32 }
 0x2f2   :  { %v224_v35 = vrot.slane %v223_v34, 4 }
 0x2f4   :  { %v225_v36 = vadd.f32 %v224_v35, %v223_v34 }
 0x2f6   :  { %v226_v37 = vrot.slane %v225_v36, 2 }
 0x2f8   :  { %v227_v38 = vadd.f32 %v226_v37, %v225_v36 }
 0x2fa   :  { %v228_v39 = vrot.slane %v227_v38, 1 }
 0x2fc   :  { %v229_v40 = vadd.f32 %v228_v39, %v227_v38 }
 0x2fe   :  { %v230_v41 = vadd.f32 1e-09, %v229_v40 }
 0x300   :  { %867 = vrcp.f32 %v230_v41 }
 0x30a   :  { %v868_v42 = vpop.eup %867 }
 0x30b   :  { %v232_v43 = vmul.f32 %v868_v42, %v218_v29  ;;  %v233_v44 = vmul.f32 %v868_v42, %v220_v31 }
 0x30d   :  { %v846_v45 = vpack.c.bf16 %v233_v44, %v232_v43 }
 0x30f   :  { %847 = vmatpush3.bf16.msra.mxu0 %v846_v45 }
 0x310   :  { %823 = vmatprep.subr.mxu0 %v905_v1 }
 0x312   :  { %816 = vmatmul.mubr.msk.f32.vlgmr.msra.gmra.mrb[2].mxu0 %vm198_vm3, %v1000_v46 }
 0x313   :  { %824 = vmatpush3.msk.msra.mxu0 %vm40_vm0, %v1006_v47  ;;  %825 = vmatprep.mubr.msk.f32.mxu0 %vm906_vm2, %v905_v1 }
 0x314   :  { %848 = vmatprep.subr.bf16.mxu0 %v908_v25 }
 0x316   :  { %826 = vmatmul.mubr.msk.f32.vlgmr.msra.gmra.mrb[4].mxu0 %vm36_vm1, %v958_v2 }
 0x317   :  { %837 = vmatprep.mubr.msk.f32.mxu0 %vm906_vm2, %v905_v1 }
 0x3e5   :  { %v303_v49 = vpop.f32.mrb[2].mxu0 }
 0x3e6   :  { %v817_v50 = vpop.f32.mrb[3].mxu0  ;;  %819 = vmatpush3.msk.msra.mxu1 %vm40_vm0, %v303_v49 }
 0x3e7   :  { %821 = vmatmul.mubr.msk.f32.vlgmr.msra.gmra.mrb[2].mxu1 %vm36_vm1, %v1021_v48 }
 0x3e8   :  { %830 = vmatprep.mubr.msk.f32.mxu1 %vm36_vm1, %v972_v5 }
 0x3e9   :  { %v459_v51 = vpop.f32.mrb[4].mxu0 }
 0x3ea   :  { %v460_v52 = vadd.f32 %v459_v51, %v976_v6  ;;  %v827_v53 = vpop.f32.mrb[5].mxu0 }
 0x3ec   :  { %828 = vmatprep.subr.msk.mxu1 %vm40_vm0, %v460_v52 }
 0x3ed   :  { %829 = vmatpush3.msk.msra.mxu1 %vm40_vm0, %v460_v52 }
 0x3ee   :  { %831 = vmatmul.mubr.msk.f32.vlgmr.msra.gmra.mrb[4].mxu1 %vm36_vm1, %v982_v10  ;;  %840 = vmatprep.subr.mxu1 %v905_v1 }
 0x3ef   :  { %842 = vmatprep.mubr.msk.f32.mxu1 %vm906_vm2, %v905_v1 }
 0x4ba   :  { %v379_v54 = vpop.f32.mrb[2].mxu1 }
 0x4bb   :  { %v822_v55 = vpop.f32.mrb[3].mxu1  ;;  %v384_v7 = vsel %vm383_vm4, %v379_v54, 0.0 }
 0x4c1   :  { %v832_v56 = vpop.f32.mrb[4].mxu1 }
 0x4c2   :  { %v532_v57 = vpop.f32.mrb[5].mxu1  ;;  %v544_v59 = vsel %vm198_vm3, %v832_v56, -inf }
 0x4c3   :  { %v541_v58 = vsel %vm198_vm3, %v532_v57, -inf }
 0x4c4   :  { %542 = vmax.xlane.f32.xlu1 %v541_v58 }
 0x4c8   :  { %545 = vmax.xlane.f32.xlu1 %v544_v59 }
 0x551   :  { %v543_v60 = vpop.xlane.xlu1 %542 }
 0x552   :  { %v547_v61 = vsub.f32 %v532_v57, %v543_v60 }
 0x554   :  { %v549_v62 = vmul.f32 1.442695, %v547_v61 }
 0x555   :  { %v546_v63 = vpop.xlane.xlu1 %545 }
 0x556   :  { %869 = vpow2.f32 %v549_v62  ;;  %v548_v2 = vsub.f32 %v832_v56, %v546_v63 }
 0x558   :  { %v551_v3 = vmul.f32 1.442695, %v548_v2 }
 0x55a   :  { %871 = vpow2.f32 %v551_v3 }
 0x560   :  { %v870_v4 = vpop.eup %869 }
 0x561   :  { %v553_v1 = vsel %vm198_vm3, %v870_v4, 0.0 }
 0x562   :  { %554 = vadd.xlane.f32.xlu1 %v553_v1 }
 0x564   :  { %v872_v5 = vpop.eup %871 }
 0x565   :  { %v556_v6 = vsel %vm198_vm3, %v872_v5, 0.0 }
 0x566   :  { %557 = vadd.xlane.f32.xlu1 %v556_v6 }
 0x56a   :  { %385 = vadd.xlane.f32.xlu1 %v384_v7 }
 0x5ef   :  { %v555_v8 = vpop.xlane.xlu1 %554 }
 0x5f0   :  { %873 = vrcp.f32 %v555_v8 }
 0x5f3   :  { %v558_v9 = vpop.xlane.xlu1 %557 }
 0x5f4   :  { %875 = vrcp.f32 %v558_v9 }
 0x5f7   :  { %v386_v33 = vpop.xlane.xlu1 %385 }
 0x5fa   :  { %v874_v10 = vpop.eup %873 }
 0x5fb   :  { %v560_v11 = vmul.f32 %v874_v10, %v870_v4 }
 0x5fd   :  { %v563_v14 = vsel %vm198_vm3, %v560_v11, 0.0 }
 0x5fe   :  { %v876_v12 = vpop.eup %875 }
 0x5ff   :  { %v562_v13 = vmul.f32 %v876_v12, %v872_v5 }
 0x601   :  { %v564_v15 = vsel %vm198_vm3, %v562_v13, 0.0 }
 0x602   :  { %v565_v16 = vadd.f32 %v564_v15, %v563_v14 }
 0x604   :  { %v566_v17 = vrot.slane %v565_v16, 4 }
 0x606   :  { %v567_v18 = vadd.f32 %v566_v17, %v565_v16 }
 0x608   :  { %v568_v19 = vrot.slane %v567_v18, 2 }
 0x60a   :  { %v569_v20 = vadd.f32 %v568_v19, %v567_v18 }
 0x60c   :  { %v570_v21 = vrot.slane %v569_v20, 1 }
 0x60e   :  { %v571_v22 = vadd.f32 %v570_v21, %v569_v20 }
 0x610   :  { %v572_v23 = vadd.f32 1e-09, %v571_v22 }
 0x612   :  { %877 = vrcp.f32 %v572_v23 }
 0x61c   :  { %v878_v24 = vpop.eup %877 }
 0x61d   :  { %v574_v25 = vmul.f32 %v878_v24, %v560_v11  ;;  %v575_v26 = vmul.f32 %v878_v24, %v562_v13 }
 0x61f   :  { %v849_v27 = vpack.c.bf16 %v575_v26, %v574_v25 }
 0x621   :  { %850 = vmatpush3.bf16.msra.mxu0 %v849_v27 }
 0x624   :  { %838 = vmatmul.mubr.msk.f32.vlgmr.msra.gmra.mrb[6].mxu0 %vm198_vm3, %v1000_v46 }
 0x6f7   :  { %v642_v28 = vpop.f32.mrb[6].mxu0 }
 0x6f8   :  { %v839_v29 = vpop.f32.mrb[7].mxu0  ;;  %841 = vmatpush3.msk.msra.mxu1 %vm40_vm0, %v642_v28 }
 0x6f9   :  { %843 = vmatmul.mubr.msk.f32.vlgmr.msra.gmra.mrb[6].mxu1 %vm36_vm1, %v1021_v48 }
 0x7cc   :  { %v715_v30 = vpop.f32.mrb[6].mxu1 }
 0x7cd   :  { %v719_v31 = vsel %vm383_vm4, %v715_v30, 0.0  ;;  %v844_v32 = vpop.f32.mrb[7].mxu1 }
 0x7ce   :  { %720 = vadd.xlane.f32.xlu1 %v719_v31 }
 0x85b   :  { %v721_v34 = vpop.xlane.xlu1 %720 }
 0x85c   :  { %v722_v35 = vadd.f32 %v721_v34, %v386_v33 }
 0x85e   :  { %v723_v36 = vmul.f32 0.03125, %v722_v35 }
 0x860   :  { %v724_v37 = vsub.f32 %v379_v54, %v723_v36  ;;  %v730_v38 = vsub.f32 %v715_v30, %v723_v36 }
 0x862   :  { %v731_v39 = vmul.f32 %v730_v38, %v730_v38  ;;  %v725_v40 = vmul.f32 %v724_v37, %v724_v37 }
 0x864   :  { %v732_v41 = vsel %vm383_vm4, %v731_v39, 0.0  ;;  %v726_v42 = vsel %vm383_vm4, %v725_v40, 0.0 }
 0x865   :  { %733 = vadd.xlane.f32.xlu1 %v732_v41  ;;  %727 = vadd.xlane.f32.xlu0 %v726_v42 }
 0x8f2   :  { %v734_v43 = vpop.xlane.xlu1 %733  ;;  %v728_v44 = vpop.xlane.xlu0 %727 }
 0x8f3   :  { %v735_v45 = vadd.f32 %v734_v43, %v728_v44 }
 0x8f5   :  { %v736_v46 = vmul.f32 0.03125, %v735_v45 }
 0x8f7   :  { %v737_v48 = vadd.f32 1e-05, %v736_v46 }
 0x8f9   :  { %879 = vrsqrt.f32 %v737_v48 }
 0x903   :  { %v880_v49 = vpop.eup %879 }
 0x904   :  { %v739_v50 = vmul.f32 %v880_v49, %v724_v37  ;;  %v743_v51 = vmul.f32 %v880_v49, %v730_v38 }
 0x906   :  { %v740_v52 = vadd.f32 %v739_v50, %v950_v0  ;;  %v744_v53 = vadd.f32 %v1006_v47, %v743_v51 }
 0x908   :  { %v741_v54 = vmax.f32 %v740_v52, 0.0  ;;  %v745_v55 = vmax.f32 %v744_v53, 0.0 }
 0x90a   :  { %742 = vst.msk [vmem:[#allocation2] sm:$0xf] %vm383_vm4, %v741_v54  ;;  %747 = vst.msk [vmem:[#allocation2 + $0x4] sm:$0xf] %vm383_vm4, %v745_v55 }
 0x90b   :  { %892 = shalt.err (!%p889_p4)
}
 0x90c   :  { %s893_s12 = scalar_lea.hbm %s1073_s6, 128 }
 0x90d   :  { %p894_p5 = scmp.ne.s32.totalorder %s1073_s6, %s893_s12  ;;  %p897_p6 = scmp.lt.u32.totalorder %s893_s12, %s1073_s6 }
 0x90f   :  { %p899_p7 = pnand %p897_p6, %p894_p5 }
 0x911   :  { %902 = shalt.err (!%p899_p7)
}
 0x912   :  { %s910_s17 = smov 64   ;;  %s911_s18 = smov 4  }
 0x913   :  { %759 = dma.vmem_to_hbm [thread:$0]  %s754_s5, 128, %s1073_s6, [#allocation3], %s910_s17, %s910_s17, %s911_s18  }
 0x914   :  { %903 = dma.done.wait [#allocation3], 128  }
 0x915   :  { %904 = vsyncadd [#allocation3], 4294967168 }
 0x916   :  { %763 = vsyncpa [#allocation3], 1 }

</bundles_post_ra>
